<compile_context>
chip_gen: v6e
topology: v6e:2x2x1
jax: 0.10.0
libtpu: 0.0.40
codegen_flags: <defaults>
</compile_context>

<pallas_src>
import functools

import jax
import jax.numpy as jnp
from jax.experimental import pallas as pl
from jax.experimental.pallas import tpu as pltpu

_EPS = 1e-5          # nn.BatchNorm1d default
_NEG_BIG = -1e30     # pad-class logit bias -> softmax contribution exactly 0


def _round_up(v, m):
    return ((v + m - 1) // m) * m


def _pick_batch_tile(batch, feat, hp, vmem_budget=32 * 1024 * 1024):
    """Largest batch tile (multiple of 8, <=1024) whose double-buffered working set
    fits a conservative VMEM budget (safe on v7x's 64 MiB; trivial on v5e/v6e)."""
    # Constant-index-map blocks (W1 bf16, packed params, stats), double-buffered.
    resident = 2 * (feat * hp * 2 + 8 * hp * 4 + 2 * hp * 4)
    # Per-batch-row streamed bytes: x tile (f32) in + h tile (bf16) out, double-buffered.
    per_row = 2 * (feat * 4 + hp * 2)
    avail = max(vmem_budget - resident - (2 << 20), per_row * 8)
    cap = min(1024, max(8, (avail // per_row) // 8 * 8))
    if batch <= cap:
        return batch            # full batch dim as one block -> always legal
    return cap                  # multiple of 8; tail tile handled by cdiv + mask


# --------------------------------------------------------------------------- #
# Kernel 1: Linear(num_features, 100) + streaming BatchNorm statistics
# --------------------------------------------------------------------------- #
def _linear1_stats_kernel(x_ref, w1_ref, p1_ref, h_ref, stats_ref, *, batch):
    i = pl.program_id(0)

    @pl.when(i == 0)
    def _init():
        stats_ref[...] = jnp.zeros_like(stats_ref)

    # Cast x on the VPU right before the MXU dot (f32 HBM read, bf16 operands,
    # f32 accumulation).
    x = x_ref[...].astype(jnp.bfloat16)
    h = jnp.dot(x, w1_ref[...], preferred_element_type=jnp.float32)
    h = h + p1_ref[0:1, :]                       # row 0 of packed params = b1
    h_ref[...] = h.astype(h_ref.dtype)           # lane-dense bf16 (tile_b, 128) store

    # Mask rows past the true batch (tail tile) out of the statistics.
    tile_b = h.shape[0]
    row_ids = jax.lax.broadcasted_iota(jnp.int32, (tile_b, 1), 0)
    valid = (row_ids + i * tile_b) < batch
    hm = jnp.where(valid, h, 0.0)

    # One-pass stats (sum and sum of squares) as a single full-block update.
    contrib = jnp.concatenate(
        [jnp.sum(hm, axis=0, keepdims=True),
         jnp.sum(hm * hm, axis=0, keepdims=True)], axis=0)
    stats_ref[...] += contrib

    @pl.when(i == pl.num_programs(0) - 1)
    def _finalize():
        inv_n = jnp.float32(1.0 / batch)
        mean = stats_ref[0:1, :] * inv_n
        ex2 = stats_ref[1:2, :] * inv_n
        var = jnp.maximum(ex2 - mean * mean, 0.0)   # biased var, clamp cancellation
        scale = p1_ref[1:2, :] * jax.lax.rsqrt(var + _EPS)   # row 1 = gamma
        bias = p1_ref[2:3, :] - mean * scale                 # row 2 = beta
        stats_ref[...] = jnp.concatenate([scale, bias], axis=0)


# --------------------------------------------------------------------------- #
# Kernel 2: BN apply + ReLU + Linear(100, n_classes) + Softmax (exact divide)
# --------------------------------------------------------------------------- #
def _bn_relu_linear2_softmax_kernel(h_ref, stats_ref, w2_ref, b2_ref, o_ref,
                                    *, n_classes):
    h = h_ref[...].astype(jnp.float32)                        # promote bf16 -> f32
    hn = jnp.maximum(h * stats_ref[0:1, :] + stats_ref[1:2, :], 0.0)

    logits = jnp.dot(hn.astype(jnp.bfloat16), w2_ref[...],
                     preferred_element_type=jnp.float32)
    logits = logits + b2_ref[...]                 # pad classes get -1e30 bias

    m = jnp.max(logits, axis=1, keepdims=True)
    e = jnp.exp(logits - m)
    s = jnp.sum(e, axis=1, keepdims=True)
    probs = e / s                                 # exact divide (row sums == 1)
    # Keep only the real classes: tiny (tile_b, n_classes) store instead of a
    # (tile_b, 128) padded writeback + wrapper slice re-read.
    o_ref[...] = probs[:, :n_classes].astype(o_ref.dtype)


# --------------------------------------------------------------------------- #
# Wrapper
# --------------------------------------------------------------------------- #
def domain_classifier_forward(x, packed_params, n_classes):
    """Forward pass of DomainClassifier; returns the flattened softmax output.
    GradientReversalLayer is the identity in the forward pass."""
    w1p, p1, w2p, b2p = packed_params
    batch, feat = x.shape
    hp = w1p.shape[1]            # padded hidden (128)
    cp = w2p.shape[1]            # padded class dim (128)

    tile_b = _pick_batch_tile(batch, feat, hp)
    nbt = pl.cdiv(batch, tile_b)

    vmem_limit = 48 * 1024 * 1024   # headroom under v7x's 64 MiB per-TC VMEM

    cost1 = pl.CostEstimate(
        flops=2 * batch * feat * hp + 6 * batch * hp,
        transcendentals=hp,
        bytes_accessed=(batch * feat * 4 + feat * hp * 2 + 8 * hp * 4
                        + batch * hp * 2 + 2 * hp * 4))

    h, stats = pl.pallas_call(
        functools.partial(_linear1_stats_kernel, batch=batch),
        grid=(nbt,),
        in_specs=[
            pl.BlockSpec((tile_b, feat), lambda i: (i, 0)),   # x tile (f32, pipelined)
            pl.BlockSpec((feat, hp), lambda i: (0, 0)),       # W1 resident (bf16)
            pl.BlockSpec((8, hp), lambda i: (0, 0)),          # packed b1/gamma/beta
        ],
        out_specs=[
            pl.BlockSpec((tile_b, hp), lambda i: (i, 0)),     # h tiles (bf16)
            pl.BlockSpec((2, hp), lambda i: (0, 0)),          # resident accumulator
        ],
        out_shape=[
            jax.ShapeDtypeStruct((batch, hp), jnp.bfloat16),
            jax.ShapeDtypeStruct((2, hp), jnp.float32),
        ],
        compiler_params=pltpu.CompilerParams(
            dimension_semantics=("arbitrary",),               # BN reduction axis
            vmem_limit_bytes=vmem_limit),
        cost_estimate=cost1,
    )(x, w1p, p1)

    cost2 = pl.CostEstimate(
        flops=2 * batch * hp * cp + 8 * batch * cp,
        transcendentals=batch * cp,
        bytes_accessed=(batch * hp * 2 + 2 * hp * 4 + hp * cp * 2
                        + cp * 4 + batch * n_classes * 4))

    out = pl.pallas_call(
        functools.partial(_bn_relu_linear2_softmax_kernel, n_classes=n_classes),
        grid=(nbt,),
        in_specs=[
            pl.BlockSpec((tile_b, hp), lambda i: (i, 0)),     # h tile (bf16, pipelined)
            pl.BlockSpec((2, hp), lambda i: (0, 0)),          # BN scale/bias resident
            pl.BlockSpec((hp, cp), lambda i: (0, 0)),         # W2 resident (bf16)
            pl.BlockSpec((1, cp), lambda i: (0, 0)),          # b2 (padded w/ -1e30)
        ],
        out_specs=pl.BlockSpec((tile_b, n_classes), lambda i: (i, 0)),
        out_shape=jax.ShapeDtypeStruct((batch, n_classes), jnp.float32),
        compiler_params=pltpu.CompilerParams(
            dimension_semantics=("parallel",),                # megacore on v7x
            vmem_limit_bytes=vmem_limit),
        cost_estimate=cost2,
    )(h, stats, w2p, b2p)

    # .flatten() in PyTorch -> 1-D of length batch * n_classes.
    return out.reshape(-1)


# --------------------------------------------------------------------------- #
# Parameter construction (PyTorch-Linear-style init) and packing
# --------------------------------------------------------------------------- #
def init_params(key, num_features, hidden, n_classes):
    k1, k2, k3, k4 = jax.random.split(key, 4)
    bound1 = 1.0 / jnp.sqrt(num_features)
    bound2 = 1.0 / jnp.sqrt(hidden)
    # Weights stored transposed as (in, out) so the kernels compute x @ W.
    w1 = jax.random.uniform(k1, (num_features, hidden), jnp.float32, -bound1, bound1)
    b1 = jax.random.uniform(k2, (hidden,), jnp.float32, -bound1, bound1)
    gamma = jnp.ones((hidden,), jnp.float32)
    beta = jnp.zeros((hidden,), jnp.float32)
    w2 = jax.random.uniform(k3, (hidden, n_classes), jnp.float32, -bound2, bound2)
    b2 = jax.random.uniform(k4, (n_classes,), jnp.float32, -bound2, bound2)
    return (w1, b1, gamma, beta, w2, b2)


def pack_params(raw_params):
    """Pad hidden/class dims to 128 (lane-dense), cast matmul weights to bf16,
    and pack the tiny per-feature vectors into one (8, 128) block."""
    w1, b1, gamma, beta, w2, b2 = raw_params
    feat, hidden = w1.shape
    n_classes = w2.shape[1]
    hp = _round_up(hidden, 128)
    cp = _round_up(n_classes, 128)

    w1p = jnp.zeros((feat, hp), jnp.float32).at[:, :hidden].set(w1).astype(jnp.bfloat16)

    p1 = jnp.zeros((8, hp), jnp.float32)
    p1 = p1.at[0, :hidden].set(b1)          # row 0: b1        (pad = 0)
    p1 = p1.at[1, :hidden].set(gamma)       # row 1: gamma
    p1 = p1.at[1, hidden:].set(1.0)         #   pad gamma = 1 (value irrelevant)
    p1 = p1.at[2, :hidden].set(beta)        # row 2: beta      (pad = 0)

    w2p = (jnp.zeros((hp, cp), jnp.float32)
           .at[:hidden, :n_classes].set(w2).astype(jnp.bfloat16))
    b2p = jnp.full((1, cp), _NEG_BIG, jnp.float32).at[0, :n_classes].set(b2)
    return (w1p, p1, w2p, b2p)


def reference_forward(x, raw_params):
    """Pure-JAX reference mirroring the kernel numerics (bf16 matmul operands,
    f32 accumulation, biased BN variance, bf16 h round trip)."""
    w1, b1, gamma, beta, w2, b2 = raw_params
    h = jnp.dot(x.astype(jnp.bfloat16), w1.astype(jnp.bfloat16),
                preferred_element_type=jnp.float32) + b1[None, :]
    mean = jnp.mean(h, axis=0, keepdims=True)
    var = jnp.maximum(jnp.mean(h * h, axis=0, keepdims=True) - mean * mean, 0.0)
    h16 = h.astype(jnp.bfloat16).astype(jnp.float32)   # kernel stores h in bf16
    hn = (h16 - mean) * jax.lax.rsqrt(var + _EPS) * gamma[None, :] + beta[None, :]
    hn = jnp.maximum(hn, 0.0)
    logits = jnp.dot(hn.astype(jnp.bfloat16), w2.astype(jnp.bfloat16),
                     preferred_element_type=jnp.float32) + b2[None, :]
    return jax.nn.softmax(logits, axis=1).reshape(-1)


if __name__ == "__main__":
    num_features = 32
    hidden = 100          # fixed by the module architecture
    n_classes = 2
    batch = 8

    key = jax.random.PRNGKey(0)
    kx, kp = jax.random.split(key)
    x = jax.random.normal(kx, (batch, num_features), jnp.float32)
    raw_params = init_params(kp, num_features, hidden, n_classes)
    packed = pack_params(raw_params)

    out = domain_classifier_forward(x, packed, n_classes)
    out = jax.block_until_ready(out)

    assert out.shape == (batch * n_classes,)
    # Softmax rows sum to 1 (exact divide -> f32-level accuracy).
    row_sums = out.reshape(batch, n_classes).sum(axis=1)
    assert jnp.allclose(row_sums, 1.0, atol=1e-4), row_sums
    # Match the pure-JAX reference.
    ref = reference_forward(x, raw_params)
    assert jnp.allclose(out, ref, atol=2e-3), jnp.max(jnp.abs(out - ref))

    print("KERNEL_OK")
</pallas_src>

<mosaic_0001>
module attributes {stable_mosaic.version = 11 : i64} {
  func.func @_linear1_stats_kernel(%arg0: i32, %arg1: memref<8x32xf32, #tpu.memory_space<vmem>>, %arg2: memref<32x128xbf16, #tpu.memory_space<vmem>>, %arg3: memref<8x128xf32, #tpu.memory_space<vmem>>, %arg4: memref<8x128xbf16, #tpu.memory_space<vmem>>, %arg5: memref<2x128xf32, #tpu.memory_space<vmem>>) attributes {dimension_semantics = [#tpu.dimension_semantics<arbitrary>], iteration_bounds = array<i64: 1>, scalar_prefetch = 0 : i64, scratch_operands = 0 : i64, tpu.core_type = #tpu.core_type<tc>, window_params = [{transform_indices = @transform_0, window_bounds = array<i64: 8, 32>}, {pipeline_mode = #tpu.pipeline_mode<synchronous>, transform_indices = @transform_1, window_bounds = array<i64: 32, 128>}, {pipeline_mode = #tpu.pipeline_mode<synchronous>, transform_indices = @transform_2, window_bounds = array<i64: 8, 128>}, {transform_indices = @transform_3, window_bounds = array<i64: 8, 128>}, {pipeline_mode = #tpu.pipeline_mode<synchronous>, transform_indices = @transform_4, window_bounds = array<i64: 2, 128>}]} {
    %c0_i32 = arith.constant 0 : i32
    %0 = arith.cmpi eq, %arg0, %c0_i32 : i32
    %1 = arith.extui %0 : i1 to i32
    %c0_i32_0 = arith.constant 0 : i32
    %2 = arith.cmpi ne, %1, %c0_i32_0 : i32
    scf.if %2 {
      %cst_18 = arith.constant 0.000000e+00 : f32
      %34 = vector.broadcast %cst_18 : f32 to vector<2x128xf32>
      %c0_19 = arith.constant 0 : index
      %c0_20 = arith.constant 0 : index
      %35 = vector.load %arg5[%c0_19, %c0_20] : memref<2x128xf32, #tpu.memory_space<vmem>>, vector<2x128xf32>
      tpu.vector_store %arg5[%c0_19, %c0_20], %34 {strides = array<i32>} : memref<2x128xf32, #tpu.memory_space<vmem>>, vector<2x128xf32>,
    } else {
    }
    %c0 = arith.constant 0 : index
    %c0_1 = arith.constant 0 : index
    %3 = vector.load %arg1[%c0, %c0_1] : memref<8x32xf32, #tpu.memory_space<vmem>>, vector<8x32xf32>
    %4 = arith.truncf %3 : vector<8x32xf32> to vector<8x32xbf16>
    %c0_2 = arith.constant 0 : index
    %c0_3 = arith.constant 0 : index
    %5 = vector.load %arg2[%c0_2, %c0_3] : memref<32x128xbf16, #tpu.memory_space<vmem>>, vector<32x128xbf16>
    %cst = arith.constant dense<0.000000e+00> : vector<8x128xf32>
    %6 = tpu.matmul %4, %5, %cst {dimension_numbers = #tpu.dot_dimension_numbers<[1], [0], [0], [1], [0, 0, 1, 1], [], []>} : vector<8x32xbf16>, vector<32x128xbf16>, vector<8x128xf32> -> vector<8x128xf32>
    %c0_4 = arith.constant 0 : index
    %c0_5 = arith.constant 0 : index
    %7 = vector.load %arg3[%c0_4, %c0_5] : memref<8x128xf32, #tpu.memory_space<vmem>>, vector<1x128xf32>
    %8 = vector.broadcast %7 : vector<1x128xf32> to vector<8x128xf32>
    %9 = arith.addf %6, %8 : vector<8x128xf32>
    %10 = arith.truncf %9 : vector<8x128xf32> to vector<8x128xbf16>
    %c0_6 = arith.constant 0 : index
    %c0_7 = arith.constant 0 : index
    %11 = vector.load %arg4[%c0_6, %c0_7] : memref<8x128xbf16, #tpu.memory_space<vmem>>, vector<8x128xbf16>
    tpu.vector_store %arg4[%c0_6, %c0_7], %10 {strides = array<i32>} : memref<8x128xbf16, #tpu.memory_space<vmem>>, vector<8x128xbf16>,
    %12 = tpu.iota {dimensions = array<i32: 0>} : vector<8x1xi32>
    %c8_i32 = arith.constant 8 : i32
    %13 = arith.muli %arg0, %c8_i32 : i32
    %14 = vector.broadcast %13 : i32 to vector<8x1xi32>
    %15 = arith.addi %12, %14 : vector<8x1xi32>
    %c8_i32_8 = arith.constant 8 : i32
    %16 = vector.broadcast %c8_i32_8 : i32 to vector<8x1xi32>
    %17 = arith.cmpi slt, %15, %16 : vector<8x1xi32>
    %cst_9 = arith.constant 0.000000e+00 : f32
    %18 = vector.shape_cast %17 : vector<8x1xi1> to vector<8x1xi1>
    %19 = vector.broadcast %18 : vector<8x1xi1> to vector<8x128xi1>
    %20 = vector.broadcast %cst_9 : f32 to vector<8x128xf32>
    %21 = arith.select %19, %9, %20 : vector<8x128xi1>, vector<8x128xf32>
    %cst_10 = arith.constant dense<0.000000e+00> : vector<128xf32>
    %22 = vector.multi_reduction <add>, %21, %cst_10 [0] : vector<8x128xf32> to vector<128xf32>
    %23 = vector.shape_cast %22 : vector<128xf32> to vector<1x128xf32>
    %24 = arith.mulf %21, %21 : vector<8x128xf32>
    %cst_11 = arith.constant dense<0.000000e+00> : vector<128xf32>
    %25 = vector.multi_reduction <add>, %24, %cst_11 [0] : vector<8x128xf32> to vector<128xf32>
    %26 = vector.shape_cast %25 : vector<128xf32> to vector<1x128xf32>
    %27 = tpu.concatenate %23, %26 in 0 : vector<1x128xf32>, vector<1x128xf32> -> vector<2x128xf32>
    %c0_12 = arith.constant 0 : index
    %c0_13 = arith.constant 0 : index
    %28 = vector.load %arg5[%c0_12, %c0_13] : memref<2x128xf32, #tpu.memory_space<vmem>>, vector<2x128xf32>
    %29 = arith.addf %28, %27 : vector<2x128xf32>
    %c0_14 = arith.constant 0 : index
    %c0_15 = arith.constant 0 : index
    %30 = vector.load %arg5[%c0_14, %c0_15] : memref<2x128xf32, #tpu.memory_space<vmem>>, vector<2x128xf32>
    tpu.vector_store %arg5[%c0_14, %c0_15], %29 {strides = array<i32>} : memref<2x128xf32, #tpu.memory_space<vmem>>, vector<2x128xf32>,
    %c0_i32_16 = arith.constant 0 : i32
    %31 = arith.cmpi eq, %arg0, %c0_i32_16 : i32
    %32 = arith.extui %31 : i1 to i32
    %c0_i32_17 = arith.constant 0 : i32
    %33 = arith.cmpi ne, %32, %c0_i32_17 : i32
    scf.if %33 {
      %c0_18 = arith.constant 0 : index
      %c0_19 = arith.constant 0 : index
      %34 = vector.load %arg5[%c0_18, %c0_19] : memref<2x128xf32, #tpu.memory_space<vmem>>, vector<1x128xf32>
      %cst_20 = arith.constant 1.250000e-01 : f32
      %35 = vector.broadcast %cst_20 : f32 to vector<1x128xf32>
      %36 = arith.mulf %34, %35 : vector<1x128xf32>
      %c1 = arith.constant 1 : index
      %c0_21 = arith.constant 0 : index
      %37 = vector.load %arg5[%c1, %c0_21] : memref<2x128xf32, #tpu.memory_space<vmem>>, vector<1x128xf32>
      %cst_22 = arith.constant 1.250000e-01 : f32
      %38 = vector.broadcast %cst_22 : f32 to vector<1x128xf32>
      %39 = arith.mulf %37, %38 : vector<1x128xf32>
      %40 = arith.mulf %36, %36 : vector<1x128xf32>
      %41 = arith.subf %39, %40 : vector<1x128xf32>
      %cst_23 = arith.constant 0.000000e+00 : f32
      %42 = vector.broadcast %cst_23 : f32 to vector<1x128xf32>
      %43 = arith.maximumf %41, %42 : vector<1x128xf32>
      %c1_24 = arith.constant 1 : index
      %c0_25 = arith.constant 0 : index
      %44 = vector.load %arg3[%c1_24, %c0_25] : memref<8x128xf32, #tpu.memory_space<vmem>>, vector<1x128xf32>
      %cst_26 = arith.constant 9.99999974E-6 : f32
      %45 = vector.broadcast %cst_26 : f32 to vector<1x128xf32>
      %46 = arith.addf %43, %45 : vector<1x128xf32>
      %47 = math.rsqrt %46 : vector<1x128xf32>
      %48 = arith.mulf %44, %47 : vector<1x128xf32>
      %c2 = arith.constant 2 : index
      %c0_27 = arith.constant 0 : index
      %49 = vector.load %arg3[%c2, %c0_27] : memref<8x128xf32, #tpu.memory_space<vmem>>, vector<1x128xf32>
      %50 = arith.mulf %36, %48 : vector<1x128xf32>
      %51 = arith.subf %49, %50 : vector<1x128xf32>
      %52 = tpu.concatenate %48, %51 in 0 : vector<1x128xf32>, vector<1x128xf32> -> vector<2x128xf32>
      %c0_28 = arith.constant 0 : index
      %c0_29 = arith.constant 0 : index
      %53 = vector.load %arg5[%c0_28, %c0_29] : memref<2x128xf32, #tpu.memory_space<vmem>>, vector<2x128xf32>
      tpu.vector_store %arg5[%c0_28, %c0_29], %52 {strides = array<i32>} : memref<2x128xf32, #tpu.memory_space<vmem>>, vector<2x128xf32>,
    } else {
    }
    return
  }
  func.func @transform_0(%arg0: i32) -> (i32, i32) {
    %c0_i32 = arith.constant 0 : i32
    %c0_i32_0 = arith.constant 0 : i32
    return %arg0, %c0_i32 : i32, i32
  }
  func.func @transform_1(%arg0: i32) -> (i32, i32) {
    %c0_i32 = arith.constant 0 : i32
    %c0_i32_0 = arith.constant 0 : i32
    %c0_i32_1 = arith.constant 0 : i32
    return %c0_i32, %c0_i32_0 : i32, i32
  }
  func.func @transform_2(%arg0: i32) -> (i32, i32) {
    %c0_i32 = arith.constant 0 : i32
    %c0_i32_0 = arith.constant 0 : i32
    %c0_i32_1 = arith.constant 0 : i32
    return %c0_i32, %c0_i32_0 : i32, i32
  }
  func.func @transform_3(%arg0: i32) -> (i32, i32) {
    %c0_i32 = arith.constant 0 : i32
    %c0_i32_0 = arith.constant 0 : i32
    return %arg0, %c0_i32 : i32, i32
  }
  func.func @transform_4(%arg0: i32) -> (i32, i32) {
    %c0_i32 = arith.constant 0 : i32
    %c0_i32_0 = arith.constant 0 : i32
    %c0_i32_1 = arith.constant 0 : i32
    return %c0_i32, %c0_i32_0 : i32, i32
  }
}

</mosaic_0001>

<bundles_post_ra>
// kernel: tpu_custom_call.1
= control target key start
LH: loop header
LB: loop body
LE: loop exit
PB: predicated region body
PF: predicated region fallthrough
CT: control target
= control target key end

     0   :  { %10 = vsyncpa [#allocation3], 0  ;;  %s396_s0 = inlined_call_operand.hbm [shape: f32[8,32], index: 0, kind: input, shape index: {}]   ;;  %s397_s1 = inlined_call_operand.hbm [shape: bf16[32,128], index: 1, kind: input, shape index: {}]   ;;  %s398_s2 = inlined_call_operand.hbm [shape: f32[8,128], index: 2, kind: input, shape index: {}]   ;;  %s399_s3 = inlined_call_operand.hbm [shape: bf16[8,128], index: 3, kind: output, shape index: {0}]   ;;  %s400_s4 = inlined_call_operand.hbm [shape: f32[2,128], index: 4, kind: output, shape index: {1}]  }
   0x1   :  { %11 = vsyncpa [#allocation6], 0 }
   0x2   :  { %12 = vsyncpa [#allocation4], 0 }
   0x3   :  { %13 = vsyncpa [#allocation10], 0  ;;  %s345_s15 = smov [#allocation5]  }
   0x4   :  { %s29_s16 = sshll.u32 %s345_s15, 4  ;;  %s30_s16 = int_to_ptr.vmem [resolvable:$true] %s29_s16 }
   0x5   :  { %s245_s17 = scalar_lea.vmem %s30_s16, 256  ;;  %p250_p1 = scmp.lt.s32.totalorder %s30_s16, %s30_s16 }
   0x6   :  { %p246_p0 = scmp.ne.s32.totalorder %s30_s16, %s245_s17  ;;  %p251_p2 = scmp.lt.s32.totalorder %s245_s17, %s245_s17 }
   0x8   :  { %p252_p3 = por %p251_p2, %p250_p1 }
   0xa   :  { %p253_p4 = pnand %p252_p3, %p246_p0 }
   0xc   :  { %256 = shalt.err (!%p253_p4)
}
   0xd   :  { %s346_s18 = smov 64   ;;  %s347_s19 = smov 4  }
   0xe   :  { %35 = dma.hbm_to_vmem [thread:$0]  %s397_s1, 256, %s30_s16, [#allocation6], %s346_s18, %s346_s18, %s347_s19  }
   0xf   :  { %s348_s22 = smov [#allocation2]   ;;  %s349_s24 = smov [#allocation7]  }
  0x10   :  { %s20_s23 = sshll.u32 %s348_s22, 4  ;;  %s42_s25 = sshll.u32 %s349_s24, 4  ;;  %s21_s23 = int_to_ptr.vmem [resolvable:$true] %s20_s23  ;;  %s43_s25 = int_to_ptr.vmem [resolvable:$true] %s42_s25 }
  0x11   :  { %s265_s26 = scalar_lea.vmem %s21_s23, 128  ;;  %p270_p6 = scmp.lt.s32.totalorder %s21_s23, %s21_s23 }
  0x12   :  { %p266_p5 = scmp.ne.s32.totalorder %s21_s23, %s265_s26  ;;  %p271_p7 = scmp.lt.s32.totalorder %s265_s26, %s265_s26 }
  0x14   :  { %p272_p8 = por %p271_p7, %p270_p6 }
  0x16   :  { %p273_p9 = pnand %p272_p8, %p266_p5 }
  0x18   :  { %276 = shalt.err (!%p273_p9)
}
  0x19   :  { %23 = dma.hbm_to_vmem [thread:$0]  %s396_s0, 128, %s21_s23, [#allocation3]  }
  0x1a   :  { %s285_s29 = scalar_lea.vmem %s43_s25, 128  ;;  %p290_p11 = scmp.lt.s32.totalorder %s43_s25, %s43_s25 }
  0x1b   :  { %p286_p10 = scmp.ne.s32.totalorder %s43_s25, %s285_s29  ;;  %p291_p12 = scmp.lt.s32.totalorder %s285_s29, %s285_s29 }
  0x1d   :  { %p292_p13 = por %p291_p12, %p290_p11 }
  0x1f   :  { %p293_p0 = pnand %p292_p13, %p286_p10 }
  0x21   :  { %296 = shalt.err (!%p293_p0)
}
  0x22   :  { %45 = dma.hbm_to_vmem [thread:$0]  %s398_s2, 128, %s43_s25, [#allocation6]  }
  0x23   :  { %337 = dma.done.wait [#allocation3], 128  }
  0x24   :  { %338 = vsyncadd [#allocation3], 4294967168 }
  0x25   :  { %339 = dma.done.wait [#allocation6], 384  }
  0x26   :  { %340 = vsyncadd [#allocation6], 4294966912  ;;  %v350_v0 = vmov 0.0   ;;  %vm351_vm0 = vmmov 0   ;;  %v233_v1 = vld [vmem:[#allocation5 + $0x8] sm:$0xff]   ;;  %v234_v2 = vld [vmem:[#allocation5] sm:$0xff]  }
  0x27   :  { %60 = vst [vmem:[#allocation9] sm:$0x3] %v350_v0  ;;  %216 = vmatprep.subr.bf16.mxu0 %v350_v0  ;;  %220 = vmatprep.mubr.msk.bf16.mxu0 %vm351_vm0, %v350_v0  ;;  %v61_v3 = vld [vmem:[#allocation2] sm:$0xff]  ;;  %vm84_vm1 = vcmask 261120   ;;  %v209_v5 = vld [vmem:[#allocation7] ss:$0 sm:$0xff] }
  0x28   :  { %217 = vmatpush3.bf16.msra.mxu0 %v233_v1  ;;  %v62_v4 = vpack.c.bf16 %v61_v3, %v61_v3  ;;  %s352_s0 = smov [#allocation8]  }
  0x29   :  { %218 = vmatprep.subr.bf16.mxu0 %v350_v0  ;;  %s185_s2 = sshll.u32 %s352_s0, 4  ;;  %s186_s2 = int_to_ptr.vmem [resolvable:$true] %s185_s2 }
  0x2a   :  { %s297_s5 = scalar_lea.vmem %s186_s2, 64  ;;  %p302_p2 = scmp.lt.s32.totalorder %s186_s2, %s186_s2 }
  0x2b   :  { %p298_p1 = scmp.ne.s32.totalorder %s186_s2, %s297_s5  ;;  %p303_p3 = scmp.lt.s32.totalorder %s297_s5, %s297_s5 }
  0x2c   :  { %219 = vmatpush3.bf16.msra.mxu0 %v234_v2 }
  0x2d   :  { %p304_p4 = por %p303_p3, %p302_p2 }
  0x2f   :  { %221 = vmatmul.mubr.msk.bf16.vlgmr.msra.gmra.mxu0 %vm84_vm1, %v62_v4  ;;  %p305_p5 = pnand %p304_p4, %p298_p1 }
  0xef   :  { %v122_v6 = vpop.f32.mrf.mxu0 }
  0xf0   :  { %v123_v7 = vadd.f32 %v209_v5, %v122_v6 }
  0xf1   :  { %v222_v8 = vpop.f32.mrf.mxu0 }
  0xf2   :  { %v139_v9 = vrot.slane %v123_v7, 4  ;;  %v145_v10 = vmul.f32 %v123_v7, %v123_v7  ;;  %v128_v11 = vpack.c.bf16 %v123_v7, %v123_v7 }
  0xf3   :  { %v125_v12 = vpop.f32.mrf.mxu0 }
  0xf4   :  { %v140_v13 = vadd.f32 %v139_v9, %v123_v7  ;;  %v146_v14 = vrot.slane %v145_v10, 4  ;;  %129 = vst [vmem:[#allocation8] sm:$0xf] %v128_v11 }
  0xf5   :  { %v223_v15 = vpop.f32.mrf.mxu0 }
  0xf6   :  { %308 = shalt.err (!%p305_p5)
}
  0xf7   :  { %188 = dma.vmem_to_hbm [thread:$0]  %s186_s2, 64, %s399_s3, [#allocation4]   ;;  %v141_v16 = vrot.slane %v140_v13, 2  ;;  %v147_v17 = vadd.f32 %v146_v14, %v145_v10  ;;  %vm152_vm2 = vcmask 1040384   ;;  %v154_v25 = vld [vmem:[#allocation9] sm:$0x3] }
  0xf8   :  { %v167_v36 = vld [vmem:[#allocation7 + $0x1] sm:$0x1]  ;;  %v171_v39 = vld [vmem:[#allocation7 + $0x2] sm:$0x1]  ;;  %s353_s3 = smov [#allocation9]  }
  0xf9   :  { %v142_v18 = vadd.f32 %v141_v16, %v140_v13  ;;  %v148_v19 = vrot.slane %v147_v17, 2  ;;  %s195_s8 = sshll.u32 %s353_s3, 4  ;;  %s196_s8 = int_to_ptr.vmem [resolvable:$true] %s195_s8 }
  0xfa   :  { %s317_s9 = scalar_lea.vmem %s196_s8, 32  ;;  %p322_p7 = scmp.lt.s32.totalorder %s196_s8, %s196_s8 }
  0xfb   :  { %v143_v20 = vrot.slane %v142_v18, 1  ;;  %v149_v21 = vadd.f32 %v148_v19, %v147_v17  ;;  %p318_p6 = scmp.ne.s32.totalorder %s196_s8, %s317_s9  ;;  %p323_p8 = scmp.lt.s32.totalorder %s317_s9, %s317_s9 }
  0xfd   :  { %v150_v22 = vrot.slane %v149_v21, 1  ;;  %v144_v23 = vadd.f32 %v143_v20, %v142_v18  ;;  %p324_p9 = por %p323_p8, %p322_p7 }
  0xff   :  { %v151_v24 = vadd.f32 %v150_v22, %v149_v21  ;;  %p325_p10 = pnand %p324_p9, %p318_p6 }
 0x101   :  { %v153_v26 = vsel %vm152_vm2, %v144_v23, %v151_v24 }
 0x102   :  { %v155_v27 = vadd.f32 %v154_v25, %v153_v26 }
 0x104   :  { %156 = vst [vmem:[#allocation9] sm:$0x3] %v155_v27 }
 0x10b   :  { %v160_v28 = vld [vmem:[#allocation9] sm:$0x1]  ;;  %v162_v29 = vld [vmem:[#allocation9 + $0x1] sm:$0x1] }
 0x10c   :  { %v161_v30 = vmul.f32 0.125, %v160_v28  ;;  %v163_v31 = vmul.f32 0.125, %v162_v29 }
 0x10e   :  { %v164_v32 = vmul.f32 %v161_v30, %v161_v30 }
 0x110   :  { %v165_v33 = vsub.f32 %v163_v31, %v164_v32 }
 0x112   :  { %v166_v34 = vmax.f32 %v165_v33, 0.0 }
 0x114   :  { %v168_v35 = vadd.f32 1e-05, %v166_v34 }
 0x116   :  { %235 = vrsqrt.f32 %v168_v35 }
 0x123   :  { %v236_v37 = vpop.eup %235 }
 0x124   :  { %v170_v38 = vmul.f32 %v236_v37, %v167_v36 }
 0x126   :  { %v172_v40 = vmul.f32 %v170_v38, %v161_v30 }
 0x128   :  { %v173_v41 = vsub.f32 %v171_v39, %v172_v40 }
 0x12a   :  { %v175_v42 = vrot.slane %v173_v41, 7 }
 0x12c   :  { %v177_v43 = vsel %vm152_vm2, %v170_v38, %v175_v42 }
 0x12d   :  { %178 = vst [vmem:[#allocation9] sm:$0x3] %v177_v43 }
 0x12e   :  { %328 = shalt.err (!%p325_p10)
}
 0x12f   :  { %198 = dma.vmem_to_hbm [thread:$0]  %s196_s8, 32, %s400_s4, [#allocation10]  }
 0x130   :  { %341 = dma.done.wait [#allocation4], 64  }
 0x131   :  { %342 = vsyncadd [#allocation4], 4294967232 }
 0x132   :  { %343 = dma.done.wait [#allocation10], 32  }
 0x133   :  { %344 = vsyncadd [#allocation10], 4294967264 }
 0x134   :  { %205 = vsyncpa [#allocation3], 1 }
 0x135   :  { %206 = vsyncpa [#allocation6], 1 }
 0x136   :  { %207 = vsyncpa [#allocation4], 1 }
 0x137   :  { %208 = vsyncpa [#allocation10], 1 }

</bundles_post_ra>
